<compile_context>
chip_gen: v6e
topology: v6e:2x2x1
jax: 0.10.0
libtpu: 0.0.40
codegen_flags: <defaults>
</compile_context>

<pallas_src>
import jax
import jax.numpy as jnp
from jax.experimental import pallas as pl
from jax.experimental.pallas import tpu as pltpu


def _displacement_head_kernel(x_ref, s_ref, w_ref, b_ref, o_ref):
    # x_ref: (1, C, tR, 2*W) VMEM -- lanes [0:W] hold the even image row and
    #        lanes [W:2W] the odd image row of each vertical row-pair.
    # s_ref: (W, 2*W2) VMEM      -- [even-column selector | odd-column selector]
    # w_ref: (2, C) SMEM          b_ref: (2,) SMEM
    # o_ref: (1, 2, tR, W2) VMEM
    C = x_ref.shape[1]
    W = x_ref.shape[3] // 2
    W2 = W // 2

    # 1x1 conv, 2 output channels, as unrolled VPU broadcast-FMAs.
    x0 = x_ref[0, 0]
    acc0 = w_ref[0, 0] * x0
    acc1 = w_ref[1, 0] * x0
    for c in range(1, C):
        xc = x_ref[0, c]
        acc0 = acc0 + w_ref[0, c] * xc
        acc1 = acc1 + w_ref[1, c] * xc

    # Vertical 2x pool: the two rows of each pair sit in adjacent lane halves.
    h0 = jnp.maximum(acc0[:, :W], acc0[:, W:])
    h1 = jnp.maximum(acc1[:, :W], acc1[:, W:])

    # Horizontal 2x pool: gather even/odd columns with one small MXU matmul
    # against a 0/1 selection matrix (exact), then a contiguous half-split max.
    s = s_ref[...]
    p0 = jnp.dot(h0, s, preferred_element_type=jnp.float32)
    p1 = jnp.dot(h1, s, preferred_element_type=jnp.float32)
    q0 = jnp.maximum(p0[:, :W2], p0[:, W2:])
    q1 = jnp.maximum(p1[:, :W2], p1[:, W2:])

    # Per-channel bias is constant, so adding it after the max is exact.
    o_ref[0, 0] = jax.nn.sigmoid(q0 + b_ref[0])
    o_ref[0, 1] = jax.nn.sigmoid(q1 + b_ref[1])


def _row_pair_tile(h2, c, wp, budget_bytes=8 * 1024 * 1024):
    """Largest multiple-of-8 row-pair tile that divides h2 and keeps the
    double-buffered input block under `budget_bytes` (fits every generation's
    scoped VMEM, including v7x's smaller budget)."""
    if h2 % 8 != 0:
        return h2  # full extent is always a legal block shape
    best = 8
    for t in range(8, h2 + 1, 8):
        if h2 % t == 0 and 2 * c * t * wp * 4 <= budget_bytes:
            best = t
    return best


@jax.jit
def displacement_head(x, w, b):
    """x: (N, C, H, W) float32 NCHW (same as the PyTorch module).
    w: (2, C) conv1x1 weight, b: (2,) bias.  Returns (N, 2, H//2, W//2)."""
    N, C, H, W = x.shape
    if H % 2 or W % 2:  # PyTorch MaxPool2d(2,2) floors odd spatial sizes
        x = x[:, :, : (H // 2) * 2, : (W // 2) * 2]
        H, W = (H // 2) * 2, (W // 2) * 2
    H2, W2 = H // 2, W // 2

    # Free (contiguous) reshape: each vertical row-pair laid side by side along
    # the lane axis.  No extra HBM pass over the input.
    xr = x.reshape(N, C, H2, 2 * W)
    tR = _row_pair_tile(H2, C, 2 * W)

    # Constant 0/1 column-selection matrix: [even cols | odd cols], (W, 2*W2).
    col = jnp.arange(2 * W2)
    src = jnp.where(col < W2, 2 * col, 2 * (col - W2) + 1)
    sel = (jnp.arange(W)[:, None] == src[None, :]).astype(jnp.float32)

    return pl.pallas_call(
        _displacement_head_kernel,
        out_shape=jax.ShapeDtypeStruct((N, 2, H2, W2), jnp.float32),
        grid_spec=pltpu.PrefetchScalarGridSpec(
            num_scalar_prefetch=0,
            grid=(N, H2 // tR),
            in_specs=[
                pl.BlockSpec((1, C, tR, 2 * W), lambda n, r: (n, 0, r, 0)),
                pl.BlockSpec((W, 2 * W2), lambda n, r: (0, 0)),  # fetched once
                pl.BlockSpec(memory_space=pltpu.MemorySpace.SMEM),  # w (2, C)
                pl.BlockSpec(memory_space=pltpu.MemorySpace.SMEM),  # b (2,)
            ],
            out_specs=pl.BlockSpec((1, 2, tR, W2), lambda n, r: (n, 0, r, 0)),
        ),
        compiler_params=pltpu.CompilerParams(
            dimension_semantics=("parallel", "parallel"),
            vmem_limit_bytes=32 * 1024 * 1024,
        ),
    )(xr, sel, w, b)


def reference(x, w, b):
    # pure-JAX reference of the PyTorch forward
    y = jnp.einsum("nchw,oc->nohw", x, w) + b[None, :, None, None]
    N, O, H, W = y.shape
    y = y.reshape(N, O, H // 2, 2, W // 2, 2).max(axis=(3, 5))
    return jax.nn.sigmoid(y)


if __name__ == "__main__":
    N, C, H, W = 2, 4, 16, 16
    key = jax.random.PRNGKey(0)
    kx, kw, kb = jax.random.split(key, 3)
    x = jax.random.normal(kx, (N, C, H, W), dtype=jnp.float32)
    # deterministic Conv2d-like init: U(-1/sqrt(C), 1/sqrt(C))
    bound = 1.0 / (C ** 0.5)
    w = jax.random.uniform(kw, (2, C), minval=-bound, maxval=bound, dtype=jnp.float32)
    b = jax.random.uniform(kb, (2,), minval=-bound, maxval=bound, dtype=jnp.float32)

    out = jax.block_until_ready(displacement_head(x, w, b))
    ref = reference(x, w, b)
    assert out.shape == (N, 2, H // 2, W // 2)
    assert jnp.allclose(out, ref, atol=1e-5, rtol=1e-5)
    print("KERNEL_OK")
</pallas_src>

<mosaic_0001>
module attributes {stable_mosaic.version = 11 : i64} {
  func.func @_displacement_head_kernel(%arg0: i32, %arg1: i32, %arg2: memref<1x4x8x32xf32, #tpu.memory_space<vmem>>, %arg3: memref<16x16xf32, #tpu.memory_space<vmem>>, %arg4: memref<2x4xf32, #tpu.memory_space<smem>>, %arg5: memref<2xf32, #tpu.memory_space<smem>>, %arg6: memref<1x2x8x8xf32, #tpu.memory_space<vmem>>) attributes {dimension_semantics = [#tpu.dimension_semantics<parallel>, #tpu.dimension_semantics<parallel>], iteration_bounds = array<i64: 2, 1>, scalar_prefetch = 0 : i64, scratch_operands = 0 : i64, tpu.core_type = #tpu.core_type<tc>, window_params = [{transform_indices = @transform_0, window_bounds = array<i64: 1, 4, 8, 32>}, {pipeline_mode = #tpu.pipeline_mode<synchronous>, transform_indices = @transform_1, window_bounds = array<i64: 16, 16>}, {transform_indices = @transform_2, window_bounds = array<i64: 2, 4>}, {transform_indices = @transform_3, window_bounds = array<i64: 2>}, {transform_indices = @transform_4, window_bounds = array<i64: 1, 2, 8, 8>}]} {
    %c0 = arith.constant 0 : index
    %c0_0 = arith.constant 0 : index
    %c0_1 = arith.constant 0 : index
    %c0_2 = arith.constant 0 : index
    %0 = vector.load %arg2[%c0, %c0_0, %c0_1, %c0_2] : memref<1x4x8x32xf32, #tpu.memory_space<vmem>>, vector<1x1x8x32xf32>
    %1 = vector.shape_cast %0 : vector<1x1x8x32xf32> to vector<8x32xf32>
    %c0_3 = arith.constant 0 : index
    %c0_4 = arith.constant 0 : index
    %2 = memref.load %arg4[%c0_3, %c0_4] : memref<2x4xf32, #tpu.memory_space<smem>>
    %3 = vector.broadcast %2 : f32 to vector<8x32xf32>
    %4 = arith.mulf %3, %1 : vector<8x32xf32>
    %c1 = arith.constant 1 : index
    %c0_5 = arith.constant 0 : index
    %5 = memref.load %arg4[%c1, %c0_5] : memref<2x4xf32, #tpu.memory_space<smem>>
    %6 = vector.broadcast %5 : f32 to vector<8x32xf32>
    %7 = arith.mulf %6, %1 : vector<8x32xf32>
    %c0_6 = arith.constant 0 : index
    %c1_7 = arith.constant 1 : index
    %c0_8 = arith.constant 0 : index
    %c0_9 = arith.constant 0 : index
    %8 = vector.load %arg2[%c0_6, %c1_7, %c0_8, %c0_9] : memref<1x4x8x32xf32, #tpu.memory_space<vmem>>, vector<1x1x8x32xf32>
    %9 = vector.shape_cast %8 : vector<1x1x8x32xf32> to vector<8x32xf32>
    %c0_10 = arith.constant 0 : index
    %c1_11 = arith.constant 1 : index
    %10 = memref.load %arg4[%c0_10, %c1_11] : memref<2x4xf32, #tpu.memory_space<smem>>
    %11 = vector.broadcast %10 : f32 to vector<8x32xf32>
    %12 = arith.mulf %11, %9 : vector<8x32xf32>
    %13 = arith.addf %4, %12 : vector<8x32xf32>
    %c1_12 = arith.constant 1 : index
    %c1_13 = arith.constant 1 : index
    %14 = memref.load %arg4[%c1_12, %c1_13] : memref<2x4xf32, #tpu.memory_space<smem>>
    %15 = vector.broadcast %14 : f32 to vector<8x32xf32>
    %16 = arith.mulf %15, %9 : vector<8x32xf32>
    %17 = arith.addf %7, %16 : vector<8x32xf32>
    %c0_14 = arith.constant 0 : index
    %c2 = arith.constant 2 : index
    %c0_15 = arith.constant 0 : index
    %c0_16 = arith.constant 0 : index
    %18 = vector.load %arg2[%c0_14, %c2, %c0_15, %c0_16] : memref<1x4x8x32xf32, #tpu.memory_space<vmem>>, vector<1x1x8x32xf32>
    %19 = vector.shape_cast %18 : vector<1x1x8x32xf32> to vector<8x32xf32>
    %c0_17 = arith.constant 0 : index
    %c2_18 = arith.constant 2 : index
    %20 = memref.load %arg4[%c0_17, %c2_18] : memref<2x4xf32, #tpu.memory_space<smem>>
    %21 = vector.broadcast %20 : f32 to vector<8x32xf32>
    %22 = arith.mulf %21, %19 : vector<8x32xf32>
    %23 = arith.addf %13, %22 : vector<8x32xf32>
    %c1_19 = arith.constant 1 : index
    %c2_20 = arith.constant 2 : index
    %24 = memref.load %arg4[%c1_19, %c2_20] : memref<2x4xf32, #tpu.memory_space<smem>>
    %25 = vector.broadcast %24 : f32 to vector<8x32xf32>
    %26 = arith.mulf %25, %19 : vector<8x32xf32>
    %27 = arith.addf %17, %26 : vector<8x32xf32>
    %c0_21 = arith.constant 0 : index
    %c3 = arith.constant 3 : index
    %c0_22 = arith.constant 0 : index
    %c0_23 = arith.constant 0 : index
    %28 = vector.load %arg2[%c0_21, %c3, %c0_22, %c0_23] : memref<1x4x8x32xf32, #tpu.memory_space<vmem>>, vector<1x1x8x32xf32>
    %29 = vector.shape_cast %28 : vector<1x1x8x32xf32> to vector<8x32xf32>
    %c0_24 = arith.constant 0 : index
    %c3_25 = arith.constant 3 : index
    %30 = memref.load %arg4[%c0_24, %c3_25] : memref<2x4xf32, #tpu.memory_space<smem>>
    %31 = vector.broadcast %30 : f32 to vector<8x32xf32>
    %32 = arith.mulf %31, %29 : vector<8x32xf32>
    %33 = arith.addf %23, %32 : vector<8x32xf32>
    %c1_26 = arith.constant 1 : index
    %c3_27 = arith.constant 3 : index
    %34 = memref.load %arg4[%c1_26, %c3_27] : memref<2x4xf32, #tpu.memory_space<smem>>
    %35 = vector.broadcast %34 : f32 to vector<8x32xf32>
    %36 = arith.mulf %35, %29 : vector<8x32xf32>
    %37 = arith.addf %27, %36 : vector<8x32xf32>
    %38 = vector.extract_strided_slice %33 {offsets = [0, 0], sizes = [8, 16], strides = [1, 1]} : vector<8x32xf32> to vector<8x16xf32>
    %39 = vector.extract_strided_slice %33 {offsets = [0, 16], sizes = [8, 16], strides = [1, 1]} : vector<8x32xf32> to vector<8x16xf32>
    %40 = arith.maximumf %38, %39 : vector<8x16xf32>
    %41 = vector.extract_strided_slice %37 {offsets = [0, 0], sizes = [8, 16], strides = [1, 1]} : vector<8x32xf32> to vector<8x16xf32>
    %42 = vector.extract_strided_slice %37 {offsets = [0, 16], sizes = [8, 16], strides = [1, 1]} : vector<8x32xf32> to vector<8x16xf32>
    %43 = arith.maximumf %41, %42 : vector<8x16xf32>
    %c0_28 = arith.constant 0 : index
    %c0_29 = arith.constant 0 : index
    %44 = vector.load %arg3[%c0_28, %c0_29] : memref<16x16xf32, #tpu.memory_space<vmem>>, vector<16x16xf32>
    %cst = arith.constant dense<0.000000e+00> : vector<8x16xf32>
    %45 = tpu.matmul %40, %44, %cst {dimension_numbers = #tpu.dot_dimension_numbers<[1], [0], [0], [1], [0, 0, 1, 1], [], []>} : vector<8x16xf32>, vector<16x16xf32>, vector<8x16xf32> -> vector<8x16xf32>
    %cst_30 = arith.constant dense<0.000000e+00> : vector<8x16xf32>
    %46 = tpu.matmul %43, %44, %cst_30 {dimension_numbers = #tpu.dot_dimension_numbers<[1], [0], [0], [1], [0, 0, 1, 1], [], []>} : vector<8x16xf32>, vector<16x16xf32>, vector<8x16xf32> -> vector<8x16xf32>
    %47 = vector.extract_strided_slice %45 {offsets = [0, 0], sizes = [8, 8], strides = [1, 1]} : vector<8x16xf32> to vector<8x8xf32>
    %48 = vector.extract_strided_slice %45 {offsets = [0, 8], sizes = [8, 8], strides = [1, 1]} : vector<8x16xf32> to vector<8x8xf32>
    %49 = arith.maximumf %47, %48 : vector<8x8xf32>
    %50 = vector.extract_strided_slice %46 {offsets = [0, 0], sizes = [8, 8], strides = [1, 1]} : vector<8x16xf32> to vector<8x8xf32>
    %51 = vector.extract_strided_slice %46 {offsets = [0, 8], sizes = [8, 8], strides = [1, 1]} : vector<8x16xf32> to vector<8x8xf32>
    %52 = arith.maximumf %50, %51 : vector<8x8xf32>
    %c0_31 = arith.constant 0 : index
    %53 = memref.load %arg5[%c0_31] : memref<2xf32, #tpu.memory_space<smem>>
    %54 = vector.broadcast %53 : f32 to vector<8x8xf32>
    %55 = arith.addf %49, %54 : vector<8x8xf32>
    %56 = arith.negf %55 : vector<8x8xf32>
    %57 = math.exp %56 : vector<8x8xf32>
    %cst_32 = arith.constant 1.000000e+00 : f32
    %58 = vector.broadcast %cst_32 : f32 to vector<8x8xf32>
    %59 = arith.addf %58, %57 : vector<8x8xf32>
    %60 = arith.divf %58, %59 : vector<8x8xf32>
    %c0_33 = arith.constant 0 : index
    %c0_34 = arith.constant 0 : index
    %c0_35 = arith.constant 0 : index
    %c0_36 = arith.constant 0 : index
    %61 = vector.load %arg6[%c0_33, %c0_34, %c0_35, %c0_36] : memref<1x2x8x8xf32, #tpu.memory_space<vmem>>, vector<1x1x8x8xf32>
    %62 = vector.shape_cast %61 : vector<1x1x8x8xf32> to vector<8x8xf32>
    %63 = vector.shape_cast %60 : vector<8x8xf32> to vector<1x1x8x8xf32>
    tpu.vector_store %arg6[%c0_33, %c0_34, %c0_35, %c0_36], %63 {strides = array<i32>} : memref<1x2x8x8xf32, #tpu.memory_space<vmem>>, vector<1x1x8x8xf32>,
    %c1_37 = arith.constant 1 : index
    %64 = memref.load %arg5[%c1_37] : memref<2xf32, #tpu.memory_space<smem>>
    %65 = vector.broadcast %64 : f32 to vector<8x8xf32>
    %66 = arith.addf %52, %65 : vector<8x8xf32>
    %67 = arith.negf %66 : vector<8x8xf32>
    %68 = math.exp %67 : vector<8x8xf32>
    %cst_38 = arith.constant 1.000000e+00 : f32
    %69 = vector.broadcast %cst_38 : f32 to vector<8x8xf32>
    %70 = arith.addf %69, %68 : vector<8x8xf32>
    %71 = arith.divf %69, %70 : vector<8x8xf32>
    %c0_39 = arith.constant 0 : index
    %c1_40 = arith.constant 1 : index
    %c0_41 = arith.constant 0 : index
    %c0_42 = arith.constant 0 : index
    %72 = vector.load %arg6[%c0_39, %c1_40, %c0_41, %c0_42] : memref<1x2x8x8xf32, #tpu.memory_space<vmem>>, vector<1x1x8x8xf32>
    %73 = vector.shape_cast %72 : vector<1x1x8x8xf32> to vector<8x8xf32>
    %74 = vector.shape_cast %71 : vector<8x8xf32> to vector<1x1x8x8xf32>
    tpu.vector_store %arg6[%c0_39, %c1_40, %c0_41, %c0_42], %74 {strides = array<i32>} : memref<1x2x8x8xf32, #tpu.memory_space<vmem>>, vector<1x1x8x8xf32>,
    return
  }
  func.func @transform_0(%arg0: i32, %arg1: i32) -> (i32, i32, i32, i32) {
    %c0_i32 = arith.constant 0 : i32
    %c0_i32_0 = arith.constant 0 : i32
    %c0_i32_1 = arith.constant 0 : i32
    return %arg0, %c0_i32, %arg1, %c0_i32_0 : i32, i32, i32, i32
  }
  func.func @transform_1(%arg0: i32, %arg1: i32) -> (i32, i32) {
    %c0_i32 = arith.constant 0 : i32
    %c0_i32_0 = arith.constant 0 : i32
    %c0_i32_1 = arith.constant 0 : i32
    return %c0_i32, %c0_i32_0 : i32, i32
  }
  func.func @transform_2(%arg0: i32, %arg1: i32) -> (i32, i32) {
    %c0_i32 = arith.constant 0 : i32
    %c0_i32_0 = arith.constant 0 : i32
    %c0_i32_1 = arith.constant 0 : i32
    return %c0_i32, %c0_i32_0 : i32, i32
  }
  func.func @transform_3(%arg0: i32, %arg1: i32) -> i32 {
    %c0_i32 = arith.constant 0 : i32
    %c0_i32_0 = arith.constant 0 : i32
    return %c0_i32 : i32
  }
  func.func @transform_4(%arg0: i32, %arg1: i32) -> (i32, i32, i32, i32) {
    %c0_i32 = arith.constant 0 : i32
    %c0_i32_0 = arith.constant 0 : i32
    %c0_i32_1 = arith.constant 0 : i32
    return %arg0, %c0_i32, %arg1, %c0_i32_0 : i32, i32, i32, i32
  }
}

</mosaic_0001>

<bundles_post_ra>
// kernel: displacement_head.1
= control target key start
LH: loop header
LB: loop body
LE: loop exit
PB: predicated region body
PF: predicated region fallthrough
CT: control target
= control target key end

     0   :  { %9 = vsyncpa [#allocation4], 0  ;;  %s1044_s0 = inlined_call_operand.vmem [shape: f32[2,4,8,32], index: 0, kind: input, shape index: {}]   ;;  %s1045_s1 = inlined_call_operand.vmem [shape: f32[16,16], index: 1, kind: input, shape index: {}]   ;;  %s1046_s2 = inlined_call_operand.vmem [shape: f32[2,4], index: 2, kind: input, shape index: {}]   ;;  %s1047_s3 = inlined_call_operand.vmem [shape: f32[2], index: 3, kind: input, shape index: {}]   ;;  %s1048_s4 = inlined_call_operand.hbm [shape: f32[2,2,8,8], index: 4, kind: output, shape index: {}]  }
   0x1   :  { %10 = vsyncpa [#allocation6], 0 }
   0x2   :  { %11 = vsyncpa [#allocation3], 0 }
   0x3   :  { %13 = vsyncpa [#allocation3 + $0x1], 0  ;;  %s886_s15 = smov 0   ;;  %s888_s16 = smov 0  }
   0x4   :  { %s890_s17 = smov 0   ;;  %s892_s18 = smov 0  }
   0x5   :  { %s894_s19 = smov 0   ;;  %s896_s20 = smov 0  }
   0x6 LB: > { %s591_s21 = sadd.s32 4294967295, %s850_s20   ;;  %s592_s22 = sadd.s32 4294967294, %s850_s20   ;;  %s850_s20 = sphi %s896_s20, %s19_s20   ;;  %s846_s19 = sphi %s894_s19, %s1066_s19   ;;  %s842_s18 = sphi %s892_s18, %s1065_s18   ;;  %s838_s17 = sphi %s890_s17, %s1064_s17   ;;  %s834_s16 = sphi %s888_s16, %s1063_s16   ;;  %s830_s15 = sphi %s886_s15, %s1062_s15  }
   0x7   : > { %s31_s23 = sadd.s32 1, %s846_s19  ;;  %s131_s24 = sadd.s32 1, %s838_s17 }
   0x8   : > { %p33_p0 = scmp.ge.s32.totalorder %s31_s23, 2  ;;  %p141_p1 = scmp.ne.s32.totalorder %s838_s17, %s834_s16 }
   0x9   : > { %p142_p2 = scmp.eq.s32.totalorder %s591_s21, 1  ;;  %p147_p3 = scmp.ne.s32.totalorder %s834_s16, %s830_s15 }
   0xa   : > { %s1068_s23 = smov (%p33_p0, %s31_s23), 0  ;;  %p148_p5 = scmp.eq.s32.totalorder %s592_s22, 1 }
   0xb   : > { %p926_p4 = por %p142_p2, %p141_p1  ;;  %s126_s26 = ssub.s32 %s846_s19, %s1068_s23 }
   0xc   : > { %p593_p6 = scmp.ge.s32.totalorder %s850_s20, 1  ;;  %p129_p7 = scmp.eq.s32.totalorder %s126_s26, 0 }
   0xd   : > { %s1053_s25 = scalar_select %p926_p4, 1, 0 }
   0xe   : > { %p933_p8 = por %p148_p5, %p147_p3  ;;  %p155_p9 = scmp.lt.s32.totalorder %s850_s20, 3 }
   0xf   : > { %s939_s28 = scalar_select %p129_p7, %s838_s17, %s131_s24  }
  0x10   : > { %s1054_s27 = scalar_select %p933_p8, 1, 0 }
  0x11   : > { %p941_p10 = pnand %p593_p6, %p155_p9  ;;  %p945_p11 = scmp.eq.s32.totalorder %s591_s21, 0 }
  0x12   : > { %s171_s7 = sshll.u32 %s1046_s2, 4  ;;  %s182_s10 = sshll.u32 %s1047_s3, 4  ;;  %s172_s7 = int_to_ptr.vmem [resolvable:$true] %s171_s7  ;;  %s183_s10 = int_to_ptr.vmem [resolvable:$true] %s182_s10 }
  0x13   : > { %s1055_s29 = scalar_select %p941_p10, 1, 0 }
  0x14   : > { %s1056_s30 = scalar_select %p945_p11, 1, 0 }
  0x15   : > { %p656_p12 = pneg %p941_p10  ;;  %s736_s12 = scalar_lea.vmem %s172_s7, 32 }
  0x16   : > { %p737_p0 = scmp.ne.s32.totalorder %s172_s7, %s736_s12  ;;  %p744_p5 = scmp.lt.s32.totalorder %s172_s7, %s172_s7 }
  0x17   : > { %p959_p13 = pnand %p945_p11, %p656_p12  ;;  %p745_p6 = scmp.lt.s32.totalorder %s736_s12, %s736_s12 }
  0x19   : > { %p738_p1 = pneg %p959_p13  ;;  %p746_p7 = por %p745_p6, %p744_p5 }
  0x1b   : > { %p739_p2 = pnand %p738_p1, %p737_p0 }
  0x1d   : > { %p740_p3 = pneg %p739_p2 }
  0x1f   : > { %p747_p9 = pnand %p746_p7, %p740_p3 }
  0x21   : > { %750 = shalt.err (!%p747_p9)
}
  0x22   : > { %s852_s13 = smov [#allocation2]   ;;  %s751_s14 = scalar_lea.vmem %s183_s10, 16 }
  0x23   : > { %659 = dma.vmem_to_smem (!%p959_p13), %s172_s7, 32, %s852_s13, [#allocation4]  }
  0x24   : > { %p752_p12 = scmp.ne.s32.totalorder %s183_s10, %s751_s14  ;;  %p759_p11 = scmp.lt.s32.totalorder %s183_s10, %s183_s10 }
  0x25   : > { %p760_p10 = scmp.lt.s32.totalorder %s751_s14, %s751_s14 }
  0x26   : > { %p754_p8 = pnand %p752_p12, %p738_p1 }
  0x27   : > { %p761_p0 = por %p760_p10, %p759_p11 }
  0x28   : > { %p755_p4 = pneg %p754_p8 }
  0x2a   : > { %p762_p2 = pnand %p761_p0, %p755_p4 }
  0x2c   : > { %765 = shalt.err (!%p762_p2)
}
  0x2d   : > { %s853_s21 = smov [#allocation5]   ;;  %p1058_p3 = scmp.ne.s32.totalorder %s1055_s29, 0 }
  0x2e   : > { %662 = dma.vmem_to_smem (!%p959_p13), %s183_s10, 16, %s853_s21, [#allocation6]  }
  0x2f   : > { %206 = sbr.rel (%p1058_p3) target bundleno = 554 (0x22a), region = 36  ;;  %p1059_p5 = scmp.ne.s32.totalorder (!%p1058_p3), %s1056_s30, 0 }
  0x34   : > { %817 = dma.done.wait (%p1059_p5), [#allocation4], 32  }
  0x35   : > { %819 = vsyncadd (%p1059_p5), [#allocation4], 4294967264 }
  0x36   : > { %821 = dma.done.wait (%p1059_p5), [#allocation6], 16  }
  0x37   : > { %823 = vsyncadd (%p1059_p5), [#allocation6], 4294967280 }
  0x38   : > { %216 = sfence }
  0x39   : > { %p240_p4 = scmp.lt.s32.totalorder %s842_s18, 1  ;;  %s249_s22 = sld [smem:[#allocation2]]  ;;  %v296_v0 = vld [vmem:[%s1045_s1 + $0x8] sm:$0xff]  ;;  %v854_v1 = vmov 0.0   ;;  %v295_v2 = vld [vmem:[%s1045_s1] sm:$0xff]  ;;  %vm855_vm0 = vmmov 0  }
  0x3a   : > { %s603_s29 = sld [smem:[#allocation2 + $0x80]]  ;;  %632 = vmatprep.subr.mxu0 %v854_v1  ;;  %639 = vmatprep.subr.mxu1 %v854_v1  ;;  %vm297_vm1 = vcmask 130048   ;;  %s857_s26 = smov 120   ;;  %vm463_vm2 = vcmask 64512  }
  0x3b   : > { %s241_s5 = scalar_select %p240_p4, %s842_s18, 1  ;;  %633 = vmatpush3.msra.mxu0 %v296_v0  ;;  %640 = vmatpush3.msra.mxu1 %v296_v0 }
  0x3c   : > { %s605_s6 = sld [smem:[#allocation2 + $0x1]]  ;;  %634 = vmatprep.subr.mxu0 %v854_v1  ;;  %641 = vmatprep.subr.mxu1 %v854_v1  ;;  %p1060_p10 = scmp.ne.s32.totalorder %s1053_s25, 0 }
  0x3d   : > { %s624_s30 = sshll.u32 %s241_s5, 5  ;;  %s606_s7 = sld [smem:[#allocation2 + $0x81]]  ;;  %635 = vmatpush3.msra.mxu0 %v295_v2  ;;  %636 = vmatprep.mubr.msk.f32.mxu0 %vm855_vm0, %v854_v1 }
  0x3e   : > { %s247_s10 = scalar_lea.vmem %s1044_s0, %s624_s30  ;;  %s608_s11 = sld [smem:[#allocation2 + $0x2]]  ;;  %642 = vmatpush3.msra.mxu1 %v295_v2  ;;  %643 = vmatprep.mubr.msk.f32.mxu1 %vm855_vm0, %v854_v1 }
  0x3f   : > { %v248_v3 = vld [vmem:[%s247_s10] sm:$0xff]  ;;  %v250_v4 = vstv %s249_s22  ;;  %s609_s14 = sld [smem:[#allocation2 + $0x82]]  ;;  %v604_v6 = vld [vmem:[%s247_s10 + $0x8] sm:$0xff]  ;;  %v607_v10 = vld [vmem:[%s247_s10 + $0x10] sm:$0xff]  ;;  %s856_s22 = smov 112  }
  0x40   : > { %v253_v5 = vstv %s603_s29  ;;  %s611_s21 = sld [smem:[#allocation2 + $0x3]]  ;;  %v251_v7 = vmul.f32 %v250_v4, %v248_v3  ;;  %v610_v15 = vld [vmem:[%s247_s10 + $0x18] sm:$0xff] }
  0x41   : > { %s612_s24 = sld [smem:[#allocation2 + $0x83]]  ;;  %v254_v8 = vmul.f32 %v253_v5, %v248_v3 }
  0x42   : > { %v258_v9 = vstv %s605_s6  ;;  %s454_s29 = sld [smem:[#allocation5]]  ;;  %s237_s6 = sand.u32 1, %s834_s16  }
  0x43   : > { %v259_v11 = vmul.f32 %v604_v6, %v258_v9  ;;  %v262_v12 = vstv %s606_s7  ;;  %s616_s5 = sld [smem:[#allocation5 + $0x1]]  ;;  %s600_s30 = sshll.u32 %s237_s6, 4 }
  0x44   : > { %v263_v13 = vmul.f32 %v604_v6, %v262_v12  ;;  %v268_v14 = vstv %s608_s11  ;;  %s625_s7 = sshll.u32 %s842_s18, 8  ;;  %s239_s8 = scalar_lea.vmem [#allocation7], %s600_s30 }
  0x45   : > { %v260_v16 = vadd.f32 %v259_v11, %v251_v7  ;;  %v269_v17 = vmul.f32 %v607_v10, %v268_v14  ;;  %v272_v18 = vstv %s609_s14  ;;  %s491_s9 = sshll.u32 %s239_s8, 4  ;;  %s995_s12 = scalar_lea.hbm %s1048_s4, %s625_s7  ;;  %s997_s9 = int_to_ptr.vmem [resolvable:$true] %s491_s9 }
  0x46   : > { %v273_v19 = vmul.f32 %v607_v10, %v272_v18  ;;  %v278_v20 = vstv %s611_s21  ;;  %v264_v21 = vadd.f32 %v263_v13, %v254_v8  ;;  %s999_s13 = scalar_lea.sflag [#allocation3], %s237_s6  ;;  %s766_s14 = scalar_lea.vmem %s997_s9, 256 }
  0x47   : > { %v270_v22 = vadd.f32 %v269_v17, %v260_v16  ;;  %v279_v23 = vmul.f32 %v610_v15, %v278_v20  ;;  %v282_v24 = vstv %s612_s24  ;;  %p767_p8 = scmp.ne.s32.totalorder %s997_s9, %s766_s14  ;;  %s858_s18 = smov [#allocation7]  }
  0x48   : > { %v283_v25 = vmul.f32 %v610_v15, %v282_v24  ;;  %v274_v26 = vadd.f32 %v273_v19, %v264_v21  ;;  %v455_v37 = vstv %s454_s29  ;;  %s770_s21 = sshll.u32 %s858_s18, 4  ;;  %s771_s21 = int_to_ptr.vmem [resolvable:$false] %s770_s21 }
  0x49   : > { %v280_v27 = vadd.f32 %v279_v23, %v270_v22  ;;  %v466_v41 = vstv %s616_s5  ;;  %p768_p11 = pnand %p767_p8, %p1060_p10  ;;  %s772_s24 = scalar_lea.vmem %s771_s21, 512 }
  0x4a   : > { %v284_v28 = vadd.f32 %v283_v25, %v274_v26  ;;  %p773_p1 = scmp.lt.s32.totalorder %s997_s9, %s771_s21  ;;  %p774_p6 = scmp.lt.s32.totalorder %s772_s24, %s766_s14 }
  0x4b   : > { %286 = vrot.lane.b32.xlu0 %v280_v27, %s856_s22  ;;  %p769_p13 = pneg %p768_p11 }
  0x4c   : > { %p775_p7 = por %p774_p6, %p773_p1 }
  0x4e   : > { %p776_p9 = pnand %p775_p7, %p769_p13 }
  0x4f   : > { %291 = vrot.lane.b32.xlu0 %v284_v28, %s856_s22 }
  0xbd   : > { %v287_v29 = vpop.permute.xlu0 %286 }
  0xbe   : > { %v289_v30 = vmax.f32 %v280_v27, %v287_v29 }
  0xc0   : > { %637 = vmatmul.mubr.msk.f32.vlgmr.msra.gmra.mxu0 %vm297_vm1, %v289_v30 }
  0xc1   : > { %v292_v31 = vpop.permute.xlu0 %291 }
  0xc2   : > { %v294_v32 = vmax.f32 %v284_v28, %v292_v31 }
  0xc4   : > { %644 = vmatmul.mubr.msk.f32.vlgmr.msra.gmra.mxu1 %vm297_vm1, %v294_v32 }
 0x180   : > { %v367_v33 = vpop.f32.mrf.mxu0 }
 0x181   : > { %445 = vrot.lane.b32.xlu1 %v367_v33, %s857_s26 }
 0x182   : > { %v638_v34 = vpop.f32.mrf.mxu0 }
 0x184   : > { %v440_v35 = vpop.f32.mrf.mxu1 }
 0x185   : > { %450 = vrot.lane.b32.xlu1 %v440_v35, %s857_s26 }
 0x186   : > { %v645_v36 = vpop.f32.mrf.mxu1 }
 0x1f3   : > { %v446_v38 = vpop.permute.xlu1 %445 }
 0x1f4   : > { %v448_v39 = vmax.f32 %v367_v33, %v446_v38 }
 0x1f6   : > { %v456_v40 = vadd.f32 %v455_v37, %v448_v39 }
 0x1f7   : > { %v451_v42 = vpop.permute.xlu1 %450 }
 0x1f8   : > { %v615_v43 = vmul.f32 -1.442695, %v456_v40  ;;  %v453_v44 = vmax.f32 %v440_v35, %v451_v42 }
 0x1fa   : > { %728 = vpow2.f32 %v615_v43  ;;  %v467_v45 = vadd.f32 %v466_v41, %v453_v44 }
 0x1fc   : > { %v617_v46 = vmul.f32 -1.442695, %v467_v45 }
 0x1fe   : > { %730 = vpow2.f32 %v617_v46 }
 0x207   : > { %v729_v47 = vpop.eup %728 }
 0x208   : > { %v460_v48 = vadd.f32 1.0, %v729_v47 }
 0x20a   : > { %732 = vrcp.f32 %v460_v48 }
 0x20b   : > { %v731_v49 = vpop.eup %730 }
 0x20c   : > { %v471_v50 = vadd.f32 1.0, %v731_v49 }
 0x20e   : > { %734 = vrcp.f32 %v471_v50 }
 0x217   : > { %v733_v51 = vpop.eup %732 }
 0x218   : > { %464 = vst.msk [vmem:[%s239_s8] sm:$0xff] %vm463_vm2, %v733_v51 }
 0x21b   : > { %v735_v52 = vpop.eup %734 }
 0x21c   : > { %618 = vst.msk [vmem:[%s239_s8 + $0x8] sm:$0xff] %vm463_vm2, %v735_v52 }
 0x21d   : > { %779 = shalt.err (!%p776_p9)
}
 0x21e   : > { %s780_s22 = scalar_lea.hbm %s995_s12, 256  ;;  %s784_s5 = scalar_lea.hbm %s1048_s4, 512 }
 0x21f   : > { %p781_p12 = scmp.ne.s32.totalorder %s995_s12, %s780_s22  ;;  %p785_p3 = scmp.lt.s32.totalorder %s995_s12, %s1048_s4 }
 0x220   : > { %p786_p5 = scmp.lt.s32.totalorder %s784_s5, %s780_s22 }
 0x221   : > { %p782_p0 = pnand %p781_p12, %p1060_p10 }
 0x222   : > { %p787_p4 = por %p786_p5, %p785_p3 }
 0x223   : > { %p783_p2 = pneg %p782_p0 }
 0x225   : > { %p788_p8 = pnand %p787_p4, %p783_p2 }
 0x227   : > { %791 = shalt.err (!%p788_p8)
}
 0x228   : > { %s859_s7 = smov 128   ;;  %s860_s8 = smov 8  }
 0x229   : > { %654 = dma.vmem_to_hbm [thread:$0]  (%p1060_p10), %s997_s9, 256, %s995_s12, %s999_s13, %s859_s7, %s859_s7, %s860_s8  }
 0x22a PF: > { %p671_p11 = scmp.ge.s32.totalorder %s850_s20, 2  ;;  %s506_s10 = sand.u32 1, %s830_s15  }
 0x22b   : > { %p1061_p13 = scmp.ne.s32.totalorder %s1054_s27, 0  ;;  %s507_s11 = scalar_lea.sflag [#allocation3], %s506_s10 }
 0x22d   : > { %p664_p1 = pnand %p671_p11, %p1061_p13 }
 0x22f   : > { %p665_p6 = pneg %p664_p1 }
 0x231   : > { %825 = dma.done.wait (%p665_p6), %s507_s11, 256  }
 0x232   : > { %827 = vsyncadd (%p665_p6), %s507_s11, 4294967040  ;;  %s19_s20 = sadd.s32 1, %s850_s20   ;;  %s1062_s15 = smov %s834_s16 }
 0x233   : > { %p16_p7 = scmp.ge.s32.totalorder %s19_s20, 4   ;;  %s1063_s16 = smov %s838_s17 }
 0x234   : > { %s1064_s17 = smov %s939_s28  ;;  %s1065_s18 = smov %s846_s19 }
 0x235   : > { %s1066_s19 = smov %s1068_s23  ;;  %18 = sbr.rel (!%p16_p7) target bundleno = 6 (0x6), region = 84 }
 0x23a   :  { %512 = vsyncpa [#allocation3], 1 }
 0x23b   :  { %514 = vsyncpa [#allocation3 + $0x1], 1 }
 0x23c   :  { %515 = vsyncpa [#allocation4], 1 }
 0x23d   :  { %517 = vsyncpa [#allocation4 + $0x1], 1 }
 0x23e   :  { %518 = vsyncpa [#allocation6], 1 }

</bundles_post_ra>
